<compile_context>
chip_gen: v5e
topology: v5e:2x2
jax: 0.10.0
libtpu: 0.0.40
codegen_flags: <defaults>
</compile_context>

<pallas_src>
import functools

import jax
import jax.numpy as jnp
from jax.experimental import pallas as pl
from jax.experimental.pallas import tpu as pltpu


def _round_up(x, m):
    return ((x + m - 1) // m) * m


def _weight_norm(v, g):
    """PyTorch weight_norm with dim=0: W = g * v / ||v|| (norm over non-output dims)."""
    norm = jnp.sqrt(jnp.sum(v * v, axis=(1, 2), keepdims=True))
    return g.reshape(-1, 1, 1) * v / norm


def _make_block_kernel(TL, K, dilation, has_down, compute_dtype):
    """Fused TemporalBlock over one (batch, time-tile) grid point."""
    h = (K - 1) * dilation        # causal context of ONE conv
    halo = 2 * h                  # context needed by the fused conv1 -> conv2 chain

    def kernel(*refs):
        if has_down:
            (xp_ref, xc_ref, w1_ref, b1_ref, w2_ref, b2_ref,
             wd_ref, bd_ref, out_ref) = refs
        else:
            (xp_ref, xc_ref, w1_ref, b1_ref, w2_ref, b2_ref, out_ref) = refs

        t = pl.program_id(1)                       # time-tile index
        x_cur = xc_ref[...]                        # (C_in, TL), storage dtype
        x_cur_c = x_cur if compute_dtype is None else x_cur.astype(compute_dtype)

        if halo > 0:
            # Last `halo` columns of the previous tile (DMA did the time offset).
            prev_tail = xp_ref[:, TL - halo:]      # (C_in, halo)
            # First tile: everything before t=0 is causal zero padding.
            prev_tail = jnp.where(t == 0, jnp.zeros_like(prev_tail), prev_tail)
            if compute_dtype is not None:
                prev_tail = prev_tail.astype(compute_dtype)
            xa = jnp.concatenate([prev_tail, x_cur_c], axis=1)   # (C_in, halo+TL)
        else:
            xa = x_cur_c

        # ---- conv1 + bias + ReLU over output times [t0-h, t0+TL) -----------
        # K taps folded into one contraction: (C_out, K*C_in) @ (K*C_in, TL+h).
        rhs1 = jnp.concatenate(
            [xa[:, k * dilation:k * dilation + TL + h] for k in range(K)], axis=0)
        h1 = jnp.dot(w1_ref[...], rhs1, preferred_element_type=jnp.float32)
        h1 = jnp.maximum(h1 + b1_ref[...].astype(jnp.float32), 0.0)
        if h > 0:
            # conv2's causal padding pads h1 with literal zeros (not conv1(0)).
            col = jax.lax.broadcasted_iota(jnp.int32, h1.shape, 1)
            h1 = jnp.where((t == 0) & (col < h), 0.0, h1)
        if compute_dtype is not None:
            h1 = h1.astype(compute_dtype)

        # ---- conv2 + bias + ReLU over output times [t0, t0+TL) -------------
        rhs2 = jnp.concatenate(
            [h1[:, k * dilation:k * dilation + TL] for k in range(K)], axis=0)
        h2 = jnp.dot(w2_ref[...], rhs2, preferred_element_type=jnp.float32)
        h2 = jnp.maximum(h2 + b2_ref[...].astype(jnp.float32), 0.0)

        # ---- residual path (reuses the already-loaded x tile) --------------
        if has_down:
            res = jnp.dot(wd_ref[...], x_cur_c, preferred_element_type=jnp.float32)
            res = res + bd_ref[...].astype(jnp.float32)
        else:
            res = x_cur.astype(jnp.float32)

        out_ref[...] = jnp.maximum(h2 + res, 0.0).astype(out_ref.dtype)

    return kernel


def temporal_block_fused(x, p, *, dilation, kernel_size, time_tile,
                         compute_dtype=None):
    """One fused TemporalBlock.  x: (N, C_in, L_rnd) with L_rnd % time_tile == 0."""
    N, C_in, L_rnd = x.shape
    K = kernel_size
    TL = time_tile
    assert L_rnd % TL == 0
    T = L_rnd // TL
    halo = 2 * (K - 1) * dilation
    assert halo <= TL, "time tile must cover the dilated two-conv halo"

    C_out = p["conv1_v"].shape[0]
    has_down = p["down_w"] is not None
    w_dtype = x.dtype if compute_dtype is None else compute_dtype

    # weight_norm + tap folding: (C_out, C_in, K) -> (C_out, K*C_in), tap-major.
    w1 = _weight_norm(p["conv1_v"], p["conv1_g"])
    w2 = _weight_norm(p["conv2_v"], p["conv2_g"])
    w1f = jnp.transpose(w1, (0, 2, 1)).reshape(C_out, K * C_in).astype(w_dtype)
    w2f = jnp.transpose(w2, (0, 2, 1)).reshape(C_out, K * C_out).astype(w_dtype)
    b1 = p["conv1_b"].reshape(C_out, 1).astype(jnp.float32)
    b2 = p["conv2_b"].reshape(C_out, 1).astype(jnp.float32)

    kernel = _make_block_kernel(TL, K, dilation, has_down, compute_dtype)

    def full_spec(shape):
        return pl.BlockSpec(shape, lambda n, t: (0,) * len(shape))

    in_specs = [
        # previous time tile (halo source); clamp at t=0, kernel masks to zero
        pl.BlockSpec((pl.Squeezed(), C_in, TL),
                     lambda n, t: (n, 0, jnp.maximum(t - 1, 0))),
        # current time tile
        pl.BlockSpec((pl.Squeezed(), C_in, TL), lambda n, t: (n, 0, t)),
        full_spec((C_out, K * C_in)),
        full_spec((C_out, 1)),
        full_spec((C_out, K * C_out)),
        full_spec((C_out, 1)),
    ]
    inputs = [x, x, w1f, b1, w2f, b2]
    if has_down:
        wd = p["down_w"][:, :, 0].astype(w_dtype)      # (C_out, C_in), no weight_norm
        bd = p["down_b"].reshape(C_out, 1).astype(jnp.float32)
        in_specs += [full_spec((C_out, C_in)), full_spec((C_out, 1))]
        inputs += [wd, bd]

    item = jnp.dtype(x.dtype).itemsize
    flops = 2 * N * L_rnd * (K * C_in * C_out + K * C_out * C_out
                             + (C_in * C_out if has_down else 0))
    bytes_accessed = int(N * L_rnd * (2 * C_in + C_out) * item
                         + (w1f.size + w2f.size) * jnp.dtype(w_dtype).itemsize
                         + 8 * C_out)
    # VMEM budget: double-buffered x/x/out tiles + headroom for h1/rhs temps;
    # capped well under v7x's 64 MiB physical VMEM.
    step_bytes = (2 * C_in + C_out) * TL * item
    vmem_bytes = int(min(max(6 * step_bytes + (2 << 20), 16 << 20), 48 << 20))

    return pl.pallas_call(
        kernel,
        out_shape=jax.ShapeDtypeStruct((N, C_out, L_rnd), x.dtype),
        grid=(N, T),
        in_specs=in_specs,
        out_specs=pl.BlockSpec((pl.Squeezed(), C_out, TL), lambda n, t: (n, 0, t)),
        compiler_params=pltpu.CompilerParams(
            dimension_semantics=("parallel", "parallel"),
            vmem_limit_bytes=vmem_bytes),
        cost_estimate=pl.CostEstimate(flops=flops, transcendentals=0,
                                      bytes_accessed=bytes_accessed),
    )(*inputs)


def temporal_conv_net(x, params, *, kernel_size=2, time_tile=512,
                      compute_dtype=None):
    """TemporalConvNet forward.  x: (N, C, L).

    compute_dtype=jnp.bfloat16 halves weight/matmul traffic (f32 accumulation
    and f32 bias/residual math are kept inside the kernels)."""
    N, C, L = x.shape
    K = kernel_size
    levels = len(params)
    max_halo = 2 * (K - 1) * (2 ** (levels - 1)) if levels else 1

    # One lane-dense time tile (multiple of 128) shared by all blocks; it must
    # cover the largest dilated halo of any block.
    TL = max(min(_round_up(L, 128), _round_up(time_tile, 128)),
             _round_up(max(max_halo, 1), 128))
    L_rnd = _round_up(L, TL)
    if L_rnd != L:
        # Right-align pad once for the whole net (causality keeps [0, L) exact);
        # the causal LEFT pad is handled in-kernel, no extra HBM copy per layer.
        x = jnp.pad(x, ((0, 0), (0, 0), (0, L_rnd - L)))

    for i, p in enumerate(params):
        x = temporal_block_fused(x, p, dilation=2 ** i, kernel_size=K,
                                 time_tile=TL, compute_dtype=compute_dtype)
    return x[:, :, :L]


def init_params(key, num_inputs, num_channels, kernel_size):
    params = []
    c_in = num_inputs
    for c_out in num_channels:
        key, k1, k2, k3, k4, k5, k6 = jax.random.split(key, 7)
        v1 = 0.01 * jax.random.normal(k1, (c_out, c_in, kernel_size), jnp.float32)
        v2 = 0.01 * jax.random.normal(k2, (c_out, c_out, kernel_size), jnp.float32)
        p = {
            "conv1_v": v1,
            "conv1_g": jnp.sqrt(jnp.sum(v1 * v1, axis=(1, 2))),
            "conv1_b": 0.01 * jax.random.normal(k3, (c_out,), jnp.float32),
            "conv2_v": v2,
            "conv2_g": jnp.sqrt(jnp.sum(v2 * v2, axis=(1, 2))),
            "conv2_b": 0.01 * jax.random.normal(k4, (c_out,), jnp.float32),
            "down_w": None,
            "down_b": None,
        }
        if c_in != c_out:
            p["down_w"] = 0.01 * jax.random.normal(k5, (c_out, c_in, 1), jnp.float32)
            p["down_b"] = 0.01 * jax.random.normal(k6, (c_out,), jnp.float32)
        params.append(p)
        c_in = c_out
    return params


# ----------------------- pure-JAX reference (for checking) -------------------
def _ref_causal_conv(x, w, b, dilation):
    N, C_in, L = x.shape
    C_out, _, K = w.shape
    pad = (K - 1) * dilation
    xp = jnp.pad(x, ((0, 0), (0, 0), (pad, 0)))
    acc = jnp.zeros((N, C_out, L), jnp.float32)
    for k in range(K):
        acc = acc + jnp.einsum("oi,nil->nol", w[:, :, k],
                               xp[:, :, k * dilation:k * dilation + L])
    return acc + b.reshape(1, C_out, 1)


def _ref_tcn(x, params, kernel_size):
    for i, p in enumerate(params):
        d = 2 ** i
        w1 = _weight_norm(p["conv1_v"], p["conv1_g"])
        w2 = _weight_norm(p["conv2_v"], p["conv2_g"])
        h1 = jnp.maximum(_ref_causal_conv(x, w1, p["conv1_b"], d), 0.0)
        h2 = jnp.maximum(_ref_causal_conv(h1, w2, p["conv2_b"], d), 0.0)
        if p["down_w"] is not None:
            res = _ref_causal_conv(x, p["down_w"], p["down_b"], 1)
        else:
            res = x
        x = jnp.maximum(h2 + res, 0.0)
    return x


if __name__ == "__main__":
    # Small shapes consistent with TemporalConvNet(num_inputs=4, num_channels=[8, 8])
    N, C_IN, L = 2, 4, 16
    NUM_CHANNELS = [8, 8]
    KERNEL_SIZE = 2

    key = jax.random.PRNGKey(0)
    key, xkey = jax.random.split(key)
    x = jax.random.normal(xkey, (N, C_IN, L), jnp.float32)   # layout: (N, C, L)
    params = init_params(key, C_IN, NUM_CHANNELS, KERNEL_SIZE)

    tcn = jax.jit(functools.partial(temporal_conv_net, kernel_size=KERNEL_SIZE,
                                    time_tile=512))
    out = jax.block_until_ready(tcn(x, params))
    assert out.shape == (N, NUM_CHANNELS[-1], L), out.shape

    ref = jax.block_until_ready(_ref_tcn(x, params, KERNEL_SIZE))
    assert jnp.allclose(out, ref, atol=1e-3, rtol=1e-3), \
        float(jnp.max(jnp.abs(out - ref)))
    print("KERNEL_OK")
</pallas_src>

<mosaic_0001>
module attributes {stable_mosaic.version = 11 : i64} {
  func.func @kernel(%arg0: i32, %arg1: i32, %arg2: memref<1x8x128xf32, #tpu.memory_space<vmem>>, %arg3: memref<1x8x128xf32, #tpu.memory_space<vmem>>, %arg4: memref<8x16xf32, #tpu.memory_space<vmem>>, %arg5: memref<8x1xf32, #tpu.memory_space<vmem>>, %arg6: memref<8x16xf32, #tpu.memory_space<vmem>>, %arg7: memref<8x1xf32, #tpu.memory_space<vmem>>, %arg8: memref<1x8x128xf32, #tpu.memory_space<vmem>>) attributes {dimension_semantics = [#tpu.dimension_semantics<parallel>, #tpu.dimension_semantics<parallel>], iteration_bounds = array<i64: 2, 1>, scalar_prefetch = 0 : i64, scratch_operands = 0 : i64, tpu.core_type = #tpu.core_type<tc>, window_params = [{transform_indices = @transform_0, window_bounds = array<i64: 1, 8, 128>}, {transform_indices = @transform_1, window_bounds = array<i64: 1, 8, 128>}, {pipeline_mode = #tpu.pipeline_mode<synchronous>, transform_indices = @transform_2, window_bounds = array<i64: 8, 16>}, {pipeline_mode = #tpu.pipeline_mode<synchronous>, transform_indices = @transform_3, window_bounds = array<i64: 8, 1>}, {pipeline_mode = #tpu.pipeline_mode<synchronous>, transform_indices = @transform_4, window_bounds = array<i64: 8, 16>}, {pipeline_mode = #tpu.pipeline_mode<synchronous>, transform_indices = @transform_5, window_bounds = array<i64: 8, 1>}, {transform_indices = @transform_6, window_bounds = array<i64: 1, 8, 128>}]} {
    %c0 = arith.constant 0 : index
    %c0_0 = arith.constant 0 : index
    %c0_1 = arith.constant 0 : index
    %0 = vector.load %arg3[%c0, %c0_0, %c0_1] : memref<1x8x128xf32, #tpu.memory_space<vmem>>, vector<1x8x128xf32>
    %1 = vector.shape_cast %0 : vector<1x8x128xf32> to vector<8x128xf32>
    %c0_2 = arith.constant 0 : index
    %c0_3 = arith.constant 0 : index
    %c124 = arith.constant 124 : index
    %2 = vector.load %arg2[%c0_2, %c0_3, %c124] : memref<1x8x128xf32, #tpu.memory_space<vmem>>, vector<1x8x4xf32>
    %3 = vector.shape_cast %2 : vector<1x8x4xf32> to vector<8x4xf32>
    %c0_i32 = arith.constant 0 : i32
    %4 = arith.cmpi eq, %arg1, %c0_i32 : i32
    %cst = arith.constant 0.000000e+00 : f32
    %5 = vector.broadcast %cst : f32 to vector<8x4xf32>
    %6 = arith.select %4, %5, %3 : vector<8x4xf32>
    %7 = tpu.concatenate %6, %1 in 1 : vector<8x4xf32>, vector<8x128xf32> -> vector<8x132xf32>
    %8 = vector.extract_strided_slice %7 {offsets = [0, 0], sizes = [8, 130], strides = [1, 1]} : vector<8x132xf32> to vector<8x130xf32>
    %9 = vector.extract_strided_slice %7 {offsets = [0, 2], sizes = [8, 130], strides = [1, 1]} : vector<8x132xf32> to vector<8x130xf32>
    %10 = tpu.concatenate %8, %9 in 0 : vector<8x130xf32>, vector<8x130xf32> -> vector<16x130xf32>
    %c0_4 = arith.constant 0 : index
    %c0_5 = arith.constant 0 : index
    %11 = vector.load %arg4[%c0_4, %c0_5] : memref<8x16xf32, #tpu.memory_space<vmem>>, vector<8x16xf32>
    %cst_6 = arith.constant dense<0.000000e+00> : vector<8x130xf32>
    %12 = tpu.matmul %11, %10, %cst_6 {dimension_numbers = #tpu.dot_dimension_numbers<[1], [0], [0], [1], [0, 0, 1, 1], [], []>} : vector<8x16xf32>, vector<16x130xf32>, vector<8x130xf32> -> vector<8x130xf32>
    %c0_7 = arith.constant 0 : index
    %c0_8 = arith.constant 0 : index
    %13 = vector.load %arg5[%c0_7, %c0_8] : memref<8x1xf32, #tpu.memory_space<vmem>>, vector<8x1xf32>
    %14 = vector.broadcast %13 : vector<8x1xf32> to vector<8x130xf32>
    %15 = arith.addf %12, %14 : vector<8x130xf32>
    %cst_9 = arith.constant 0.000000e+00 : f32
    %16 = vector.broadcast %cst_9 : f32 to vector<8x130xf32>
    %17 = arith.maximumf %15, %16 : vector<8x130xf32>
    %18 = tpu.iota {dimensions = array<i32: 1>} : vector<8x130xi32>
    %c0_i32_10 = arith.constant 0 : i32
    %19 = arith.cmpi eq, %arg1, %c0_i32_10 : i32
    %c2_i32 = arith.constant 2 : i32
    %20 = vector.broadcast %c2_i32 : i32 to vector<8x130xi32>
    %21 = arith.cmpi slt, %18, %20 : vector<8x130xi32>
    %22 = vector.broadcast %19 : i1 to vector<8x130xi1>
    %23 = arith.andi %22, %21 : vector<8x130xi1>
    %cst_11 = arith.constant 0.000000e+00 : f32
    %24 = vector.broadcast %cst_11 : f32 to vector<8x130xf32>
    %25 = arith.select %23, %24, %17 : vector<8x130xi1>, vector<8x130xf32>
    %26 = vector.extract_strided_slice %25 {offsets = [0, 0], sizes = [8, 128], strides = [1, 1]} : vector<8x130xf32> to vector<8x128xf32>
    %27 = vector.extract_strided_slice %25 {offsets = [0, 2], sizes = [8, 128], strides = [1, 1]} : vector<8x130xf32> to vector<8x128xf32>
    %28 = tpu.concatenate %26, %27 in 0 : vector<8x128xf32>, vector<8x128xf32> -> vector<16x128xf32>
    %c0_12 = arith.constant 0 : index
    %c0_13 = arith.constant 0 : index
    %29 = vector.load %arg6[%c0_12, %c0_13] : memref<8x16xf32, #tpu.memory_space<vmem>>, vector<8x16xf32>
    %cst_14 = arith.constant dense<0.000000e+00> : vector<8x128xf32>
    %30 = tpu.matmul %29, %28, %cst_14 {dimension_numbers = #tpu.dot_dimension_numbers<[1], [0], [0], [1], [0, 0, 1, 1], [], []>} : vector<8x16xf32>, vector<16x128xf32>, vector<8x128xf32> -> vector<8x128xf32>
    %c0_15 = arith.constant 0 : index
    %c0_16 = arith.constant 0 : index
    %31 = vector.load %arg7[%c0_15, %c0_16] : memref<8x1xf32, #tpu.memory_space<vmem>>, vector<8x1xf32>
    %32 = vector.broadcast %31 : vector<8x1xf32> to vector<8x128xf32>
    %33 = arith.addf %30, %32 : vector<8x128xf32>
    %cst_17 = arith.constant 0.000000e+00 : f32
    %34 = vector.broadcast %cst_17 : f32 to vector<8x128xf32>
    %35 = arith.maximumf %33, %34 : vector<8x128xf32>
    %36 = arith.addf %35, %1 : vector<8x128xf32>
    %cst_18 = arith.constant 0.000000e+00 : f32
    %37 = vector.broadcast %cst_18 : f32 to vector<8x128xf32>
    %38 = arith.maximumf %36, %37 : vector<8x128xf32>
    %c0_19 = arith.constant 0 : index
    %c0_20 = arith.constant 0 : index
    %c0_21 = arith.constant 0 : index
    %39 = vector.load %arg8[%c0_19, %c0_20, %c0_21] : memref<1x8x128xf32, #tpu.memory_space<vmem>>, vector<1x8x128xf32>
    %40 = vector.shape_cast %39 : vector<1x8x128xf32> to vector<8x128xf32>
    %41 = vector.shape_cast %38 : vector<8x128xf32> to vector<1x8x128xf32>
    tpu.vector_store %arg8[%c0_19, %c0_20, %c0_21], %41 {strides = array<i32>} : memref<1x8x128xf32, #tpu.memory_space<vmem>>, vector<1x8x128xf32>,
    return
  }
  func.func @transform_0(%arg0: i32, %arg1: i32) -> (i32, i32, i32) {
    %c1_i32 = arith.constant 1 : i32
    %0 = arith.subi %arg1, %c1_i32 : i32
    %c0_i32 = arith.constant 0 : i32
    %1 = arith.maxsi %0, %c0_i32 : i32
    %c0_i32_0 = arith.constant 0 : i32
    %c0_i32_1 = arith.constant 0 : i32
    return %arg0, %c0_i32_0, %1 : i32, i32, i32
  }
  func.func @transform_1(%arg0: i32, %arg1: i32) -> (i32, i32, i32) {
    %c0_i32 = arith.constant 0 : i32
    %c0_i32_0 = arith.constant 0 : i32
    return %arg0, %c0_i32, %arg1 : i32, i32, i32
  }
  func.func @transform_2(%arg0: i32, %arg1: i32) -> (i32, i32) {
    %c0_i32 = arith.constant 0 : i32
    %c0_i32_0 = arith.constant 0 : i32
    %c0_i32_1 = arith.constant 0 : i32
    return %c0_i32, %c0_i32_0 : i32, i32
  }
  func.func @transform_3(%arg0: i32, %arg1: i32) -> (i32, i32) {
    %c0_i32 = arith.constant 0 : i32
    %c0_i32_0 = arith.constant 0 : i32
    %c0_i32_1 = arith.constant 0 : i32
    return %c0_i32, %c0_i32_0 : i32, i32
  }
  func.func @transform_4(%arg0: i32, %arg1: i32) -> (i32, i32) {
    %c0_i32 = arith.constant 0 : i32
    %c0_i32_0 = arith.constant 0 : i32
    %c0_i32_1 = arith.constant 0 : i32
    return %c0_i32, %c0_i32_0 : i32, i32
  }
  func.func @transform_5(%arg0: i32, %arg1: i32) -> (i32, i32) {
    %c0_i32 = arith.constant 0 : i32
    %c0_i32_0 = arith.constant 0 : i32
    %c0_i32_1 = arith.constant 0 : i32
    return %c0_i32, %c0_i32_0 : i32, i32
  }
  func.func @transform_6(%arg0: i32, %arg1: i32) -> (i32, i32, i32) {
    %c0_i32 = arith.constant 0 : i32
    %c0_i32_0 = arith.constant 0 : i32
    return %arg0, %c0_i32, %arg1 : i32, i32, i32
  }
}

module attributes {stable_mosaic.version = 11 : i64} {
  func.func @kernel(%arg0: i32, %arg1: i32, %arg2: memref<1x4x128xf32, #tpu.memory_space<vmem>>, %arg3: memref<1x4x128xf32, #tpu.memory_space<vmem>>, %arg4: memref<8x8xf32, #tpu.memory_space<vmem>>, %arg5: memref<8x1xf32, #tpu.memory_space<vmem>>, %arg6: memref<8x16xf32, #tpu.memory_space<vmem>>, %arg7: memref<8x1xf32, #tpu.memory_space<vmem>>, %arg8: memref<8x4xf32, #tpu.memory_space<vmem>>, %arg9: memref<8x1xf32, #tpu.memory_space<vmem>>, %arg10: memref<1x8x128xf32, #tpu.memory_space<vmem>>) attributes {dimension_semantics = [#tpu.dimension_semantics<parallel>, #tpu.dimension_semantics<parallel>], iteration_bounds = array<i64: 2, 1>, scalar_prefetch = 0 : i64, scratch_operands = 0 : i64, tpu.core_type = #tpu.core_type<tc>, window_params = [{transform_indices = @transform_0, window_bounds = array<i64: 1, 4, 128>}, {transform_indices = @transform_1, window_bounds = array<i64: 1, 4, 128>}, {pipeline_mode = #tpu.pipeline_mode<synchronous>, transform_indices = @transform_2, window_bounds = array<i64: 8, 8>}, {pipeline_mode = #tpu.pipeline_mode<synchronous>, transform_indices = @transform_3, window_bounds = array<i64: 8, 1>}, {pipeline_mode = #tpu.pipeline_mode<synchronous>, transform_indices = @transform_4, window_bounds = array<i64: 8, 16>}, {pipeline_mode = #tpu.pipeline_mode<synchronous>, transform_indices = @transform_5, window_bounds = array<i64: 8, 1>}, {pipeline_mode = #tpu.pipeline_mode<synchronous>, transform_indices = @transform_6, window_bounds = array<i64: 8, 4>}, {pipeline_mode = #tpu.pipeline_mode<synchronous>, transform_indices = @transform_7, window_bounds = array<i64: 8, 1>}, {transform_indices = @transform_8, window_bounds = array<i64: 1, 8, 128>}]} {
    %c0 = arith.constant 0 : index
    %c0_0 = arith.constant 0 : index
    %c0_1 = arith.constant 0 : index
    %0 = vector.load %arg3[%c0, %c0_0, %c0_1] : memref<1x4x128xf32, #tpu.memory_space<vmem>>, vector<1x4x128xf32>
    %1 = vector.shape_cast %0 : vector<1x4x128xf32> to vector<4x128xf32>
    %c0_2 = arith.constant 0 : index
    %c0_3 = arith.constant 0 : index
    %c126 = arith.constant 126 : index
    %2 = vector.load %arg2[%c0_2, %c0_3, %c126] : memref<1x4x128xf32, #tpu.memory_space<vmem>>, vector<1x4x2xf32>
    %3 = vector.shape_cast %2 : vector<1x4x2xf32> to vector<4x2xf32>
    %c0_i32 = arith.constant 0 : i32
    %4 = arith.cmpi eq, %arg1, %c0_i32 : i32
    %cst = arith.constant 0.000000e+00 : f32
    %5 = vector.broadcast %cst : f32 to vector<4x2xf32>
    %6 = arith.select %4, %5, %3 : vector<4x2xf32>
    %7 = tpu.concatenate %6, %1 in 1 : vector<4x2xf32>, vector<4x128xf32> -> vector<4x130xf32>
    %8 = vector.extract_strided_slice %7 {offsets = [0, 0], sizes = [4, 129], strides = [1, 1]} : vector<4x130xf32> to vector<4x129xf32>
    %9 = vector.extract_strided_slice %7 {offsets = [0, 1], sizes = [4, 129], strides = [1, 1]} : vector<4x130xf32> to vector<4x129xf32>
    %10 = tpu.concatenate %8, %9 in 0 : vector<4x129xf32>, vector<4x129xf32> -> vector<8x129xf32>
    %c0_4 = arith.constant 0 : index
    %c0_5 = arith.constant 0 : index
    %11 = vector.load %arg4[%c0_4, %c0_5] : memref<8x8xf32, #tpu.memory_space<vmem>>, vector<8x8xf32>
    %cst_6 = arith.constant dense<0.000000e+00> : vector<8x129xf32>
    %12 = tpu.matmul %11, %10, %cst_6 {dimension_numbers = #tpu.dot_dimension_numbers<[1], [0], [0], [1], [0, 0, 1, 1], [], []>} : vector<8x8xf32>, vector<8x129xf32>, vector<8x129xf32> -> vector<8x129xf32>
    %c0_7 = arith.constant 0 : index
    %c0_8 = arith.constant 0 : index
    %13 = vector.load %arg5[%c0_7, %c0_8] : memref<8x1xf32, #tpu.memory_space<vmem>>, vector<8x1xf32>
    %14 = vector.broadcast %13 : vector<8x1xf32> to vector<8x129xf32>
    %15 = arith.addf %12, %14 : vector<8x129xf32>
    %cst_9 = arith.constant 0.000000e+00 : f32
    %16 = vector.broadcast %cst_9 : f32 to vector<8x129xf32>
    %17 = arith.maximumf %15, %16 : vector<8x129xf32>
    %18 = tpu.iota {dimensions = array<i32: 1>} : vector<8x129xi32>
    %c0_i32_10 = arith.constant 0 : i32
    %19 = arith.cmpi eq, %arg1, %c0_i32_10 : i32
    %c1_i32 = arith.constant 1 : i32
    %20 = vector.broadcast %c1_i32 : i32 to vector<8x129xi32>
    %21 = arith.cmpi slt, %18, %20 : vector<8x129xi32>
    %22 = vector.broadcast %19 : i1 to vector<8x129xi1>
    %23 = arith.andi %22, %21 : vector<8x129xi1>
    %cst_11 = arith.constant 0.000000e+00 : f32
    %24 = vector.broadcast %cst_11 : f32 to vector<8x129xf32>
    %25 = arith.select %23, %24, %17 : vector<8x129xi1>, vector<8x129xf32>
    %26 = vector.extract_strided_slice %25 {offsets = [0, 0], sizes = [8, 128], strides = [1, 1]} : vector<8x129xf32> to vector<8x128xf32>
    %27 = vector.extract_strided_slice %25 {offsets = [0, 1], sizes = [8, 128], strides = [1, 1]} : vector<8x129xf32> to vector<8x128xf32>
    %28 = tpu.concatenate %26, %27 in 0 : vector<8x128xf32>, vector<8x128xf32> -> vector<16x128xf32>
    %c0_12 = arith.constant 0 : index
    %c0_13 = arith.constant 0 : index
    %29 = vector.load %arg6[%c0_12, %c0_13] : memref<8x16xf32, #tpu.memory_space<vmem>>, vector<8x16xf32>
    %cst_14 = arith.constant dense<0.000000e+00> : vector<8x128xf32>
    %30 = tpu.matmul %29, %28, %cst_14 {dimension_numbers = #tpu.dot_dimension_numbers<[1], [0], [0], [1], [0, 0, 1, 1], [], []>} : vector<8x16xf32>, vector<16x128xf32>, vector<8x128xf32> -> vector<8x128xf32>
    %c0_15 = arith.constant 0 : index
    %c0_16 = arith.constant 0 : index
    %31 = vector.load %arg7[%c0_15, %c0_16] : memref<8x1xf32, #tpu.memory_space<vmem>>, vector<8x1xf32>
    %32 = vector.broadcast %31 : vector<8x1xf32> to vector<8x128xf32>
    %33 = arith.addf %30, %32 : vector<8x128xf32>
    %cst_17 = arith.constant 0.000000e+00 : f32
    %34 = vector.broadcast %cst_17 : f32 to vector<8x128xf32>
    %35 = arith.maximumf %33, %34 : vector<8x128xf32>
    %c0_18 = arith.constant 0 : index
    %c0_19 = arith.constant 0 : index
    %36 = vector.load %arg8[%c0_18, %c0_19] : memref<8x4xf32, #tpu.memory_space<vmem>>, vector<8x4xf32>
    %cst_20 = arith.constant dense<0.000000e+00> : vector<8x128xf32>
    %37 = tpu.matmul %36, %1, %cst_20 {dimension_numbers = #tpu.dot_dimension_numbers<[1], [0], [0], [1], [0, 0, 1, 1], [], []>} : vector<8x4xf32>, vector<4x128xf32>, vector<8x128xf32> -> vector<8x128xf32>
    %c0_21 = arith.constant 0 : index
    %c0_22 = arith.constant 0 : index
    %38 = vector.load %arg9[%c0_21, %c0_22] : memref<8x1xf32, #tpu.memory_space<vmem>>, vector<8x1xf32>
    %39 = vector.broadcast %38 : vector<8x1xf32> to vector<8x128xf32>
    %40 = arith.addf %37, %39 : vector<8x128xf32>
    %41 = arith.addf %35, %40 : vector<8x128xf32>
    %cst_23 = arith.constant 0.000000e+00 : f32
    %42 = vector.broadcast %cst_23 : f32 to vector<8x128xf32>
    %43 = arith.maximumf %41, %42 : vector<8x128xf32>
    %c0_24 = arith.constant 0 : index
    %c0_25 = arith.constant 0 : index
    %c0_26 = arith.constant 0 : index
    %44 = vector.load %arg10[%c0_24, %c0_25, %c0_26] : memref<1x8x128xf32, #tpu.memory_space<vmem>>, vector<1x8x128xf32>
    %45 = vector.shape_cast %44 : vector<1x8x128xf32> to vector<8x128xf32>
    %46 = vector.shape_cast %43 : vector<8x128xf32> to vector<1x8x128xf32>
    tpu.vector_store %arg10[%c0_24, %c0_25, %c0_26], %46 {strides = array<i32>} : memref<1x8x128xf32, #tpu.memory_space<vmem>>, vector<1x8x128xf32>,
    return
  }
  func.func @transform_0(%arg0: i32, %arg1: i32) -> (i32, i32, i32) {
    %c1_i32 = arith.constant 1 : i32
    %0 = arith.subi %arg1, %c1_i32 : i32
    %c0_i32 = arith.constant 0 : i32
    %1 = arith.maxsi %0, %c0_i32 : i32
    %c0_i32_0 = arith.constant 0 : i32
    %c0_i32_1 = arith.constant 0 : i32
    return %arg0, %c0_i32_0, %1 : i32, i32, i32
  }
  func.func @transform_1(%arg0: i32, %arg1: i32) -> (i32, i32, i32) {
    %c0_i32 = arith.constant 0 : i32
    %c0_i32_0 = arith.constant 0 : i32
    return %arg0, %c0_i32, %arg1 : i32, i32, i32
  }
  func.func @transform_2(%arg0: i32, %arg1: i32) -> (i32, i32) {
    %c0_i32 = arith.constant 0 : i32
    %c0_i32_0 = arith.constant 0 : i32
    %c0_i32_1 = arith.constant 0 : i32
    return %c0_i32, %c0_i32_0 : i32, i32
  }
  func.func @transform_3(%arg0: i32, %arg1: i32) -> (i32, i32) {
    %c0_i32 = arith.constant 0 : i32
    %c0_i32_0 = arith.constant 0 : i32
    %c0_i32_1 = arith.constant 0 : i32
    return %c0_i32, %c0_i32_0 : i32, i32
  }
  func.func @transform_4(%arg0: i32, %arg1: i32) -> (i32, i32) {
    %c0_i32 = arith.constant 0 : i32
    %c0_i32_0 = arith.constant 0 : i32
    %c0_i32_1 = arith.constant 0 : i32
    return %c0_i32, %c0_i32_0 : i32, i32
  }
  func.func @transform_5(%arg0: i32, %arg1: i32) -> (i32, i32) {
    %c0_i32 = arith.constant 0 : i32
    %c0_i32_0 = arith.constant 0 : i32
    %c0_i32_1 = arith.constant 0 : i32
    return %c0_i32, %c0_i32_0 : i32, i32
  }
  func.func @transform_6(%arg0: i32, %arg1: i32) -> (i32, i32) {
    %c0_i32 = arith.constant 0 : i32
    %c0_i32_0 = arith.constant 0 : i32
    %c0_i32_1 = arith.constant 0 : i32
    return %c0_i32, %c0_i32_0 : i32, i32
  }
  func.func @transform_7(%arg0: i32, %arg1: i32) -> (i32, i32) {
    %c0_i32 = arith.constant 0 : i32
    %c0_i32_0 = arith.constant 0 : i32
    %c0_i32_1 = arith.constant 0 : i32
    return %c0_i32, %c0_i32_0 : i32, i32
  }
  func.func @transform_8(%arg0: i32, %arg1: i32) -> (i32, i32, i32) {
    %c0_i32 = arith.constant 0 : i32
    %c0_i32_0 = arith.constant 0 : i32
    return %arg0, %c0_i32, %arg1 : i32, i32, i32
  }
}

</mosaic_0001>

<bundles_post_ra>
// kernel: temporal_conv_net.3
= control target key start
LH: loop header
LB: loop body
LE: loop exit
PB: predicated region body
PF: predicated region fallthrough
CT: control target
= control target key end

     0   :  { %11 = vsyncpa [#allocation3], 0  ;;  %s887_s0 = inlined_call_operand.vmem [shape: f32[2,8,128], index: 0, kind: input, shape index: {}, may-alias: {0,1}]   ;;  %s888_s1 = inlined_call_operand.vmem [shape: f32[2,8,128], index: 1, kind: input, shape index: {}, may-alias: {0,1}]   ;;  %s889_s2 = inlined_call_operand.vmem [shape: f32[8,16], index: 2, kind: input, shape index: {}]   ;;  %s890_s3 = inlined_call_operand.vmem [shape: f32[8,1], index: 3, kind: input, shape index: {}]   ;;  %s891_s4 = inlined_call_operand.vmem [shape: f32[8,16], index: 4, kind: input, shape index: {}]   ;;  %s892_s5 = inlined_call_operand.vmem [shape: f32[8,1], index: 5, kind: input, shape index: {}]   ;;  %s893_s6 = inlined_call_operand.hbm [shape: f32[2,8,128], index: 6, kind: output, shape index: {}]  }
   0x1   :  { %13 = vsyncpa [#allocation3 + $0x1], 0  ;;  %s767_s0 = smov 0   ;;  %s769_s21 = smov 0  }
   0x2   :  { %s771_s22 = smov 0   ;;  %s773_s23 = smov 0  }
   0x3   :  { %s775_s24 = smov 0   ;;  %s777_s25 = smov 0  }
   0x4 LB: > { %s554_s26 = sadd.s32 4294967295, %s726_s25   ;;  %s555_s27 = sadd.s32 4294967294, %s726_s25   ;;  %s726_s25 = sphi %s777_s25, %s19_s25   ;;  %s722_s24 = sphi %s775_s24, %s900_s24   ;;  %s718_s23 = sphi %s773_s23, %s899_s23   ;;  %s714_s22 = sphi %s771_s22, %s898_s22   ;;  %s710_s21 = sphi %s769_s21, %s897_s21   ;;  %s706_s0 = sphi %s767_s0, %s896_s0  }
   0x5   : > { %s31_s28 = sadd.s32 1, %s722_s24  ;;  %s186_s29 = sadd.s32 1, %s714_s22 }
   0x6   : > { %p33_p0 = scmp.ge.s32.totalorder %s31_s28, 2  ;;  %p196_p1 = scmp.ne.s32.totalorder %s714_s22, %s710_s21 }
   0x7   : > { %p197_p2 = scmp.eq.s32.totalorder %s554_s26, 1  ;;  %p202_p3 = scmp.ne.s32.totalorder %s710_s21, %s706_s0 }
   0x8   : > { %s902_s28 = smov (%p33_p0, %s31_s28), 0  ;;  %p203_p5 = scmp.eq.s32.totalorder %s555_s27, 1 }
   0x9   : > { %p807_p4 = por %p197_p2, %p196_p1  ;;  %s181_s7 = ssub.s32 %s722_s24, %s902_s28 }
   0xa   : > { %p558_p6 = scmp.ge.s32.totalorder %s726_s25, 1  ;;  %p184_p7 = scmp.eq.s32.totalorder %s181_s7, 0 }
   0xb   : > { %p814_p8 = por %p203_p5, %p202_p3  ;;  %p259_p9 = scmp.lt.s32.totalorder %s726_s25, 3 }
   0xc   : > { %s820_s9 = scalar_select %p184_p7, %s714_s22, %s186_s29  }
   0xd   : > { %p260_p10 = pnand %p558_p6, %p259_p9 }
   0xe   : > { %p314_p11 = scmp.lt.s32.totalorder (!%p260_p10), %s718_s23, 1  ;;  %s729_s15 = smov (!%p260_p10), 4  }
   0xf   : > { %263 = sbr.rel (%p260_p10) target bundleno = 665 (0x299), region = 44  ;;  %s730_s16 = smov (!%p260_p10), 126  }
  0x10   : > { %s568_s12 = sshll.u32 (!%p260_p10), %s718_s23, 3  ;;  %s668_s29 = scalar_lea.hbm (!%p260_p10), %s893_s6, 16 }
  0x14   : > { %s315_s10 = scalar_select %p314_p11, %s718_s23, 1  ;;  %v728_v1 = vmov 0.0   ;;  %vm336_vm0 = vcmask 31744   ;;  %v348_v8 = vld [vmem:[%s890_s3] sm:$0xff]  ;;  %v731_v9 = vmov 0   ;;  %vm343_vm1 = vcmask 1031168  }
  0x15   : > { %640 = vset.pattern.permute.xlu1 %v731_v9  ;;  %646 = vset.pattern.permute.xlu2 %v731_v9  ;;  %v347_v14 = vld [vmem:[%s889_s2] sm:$0xff]  ;;  %vm354_vm2 = vcmask 130048   ;;  %v400_v15 = vlaneseq }
  0x16   : > { %s561_s11 = sshll.u32 %s315_s10, 3  ;;  %351 = vperm.xlu1 %640, %v348_v8   ;;  %647 = vset.pattern.permute.xlu0 %v731_v9  ;;  %v418_v26 = vld [vmem:[%s892_s5] sm:$0xff]  ;;  %s298_s10 = sand.u32 1, %s710_s21  }
  0x17   : > { %s320_s14 = scalar_lea.vmem %s888_s1, %s561_s11  ;;  %v401_v17 = vand.u32 127, %v400_v15  ;;  %421 = vperm.xlu2 %646, %v418_v26   ;;  %v417_v31 = vld [vmem:[%s891_s4] sm:$0xff]  ;;  %s559_s11 = sshll.u32 %s298_s10, 3 }
  0x18   : > { %v827_v0 = vld [vmem:[%s320_s14] sm:$0xff]  ;;  %s452_s19 = scalar_lea.sflag [#allocation3], %s298_s10 }
  0x19   : > { %v630_v2 = vpack.i.bf16 %v827_v0, %v728_v1  ;;  %vm403_vm3 = vcmp.lt.s32.totalorder %v401_v17, 2 }
  0x1a   : > { %vm564_vm4 = vmneg %vm403_vm3 }
  0x1b   : > { %631 = vrot.lane.b32.xlu0 %v630_v2, %s729_s15  ;;  %s463_s15 = scalar_lea.hbm %s893_s6, %s568_s12 }
  0x1c   : > { %s467_s18 = sshll.u32 %s463_s15, 4  ;;  %s468_s18 = int_to_ptr.hbm [resolvable:$true] %s467_s18 }
  0x1d   : > { %s662_s20 = sshra.s32 %s468_s18, 4  ;;  %s663_s20 = int_to_ptr.hbm [resolvable:$true] %s662_s20 }
  0x1e   : > { %s664_s23 = scalar_lea.hbm %s663_s20, 8  ;;  %p669_p1 = scmp.lt.s32.totalorder %s663_s20, %s893_s6 }
  0x1f   : > { %p665_p12 = scmp.ne.s32.totalorder %s663_s20, %s664_s23  ;;  %p670_p2 = scmp.lt.s32.totalorder %s668_s29, %s664_s23 }
  0x21   : > { %p666_p13 = pnand %p665_p12, %p807_p4  ;;  %p671_p3 = por %p670_p2, %p669_p1 }
  0x23   : > { %p667_p0 = pneg %p666_p13 }
  0x25   : > { %p672_p5 = pnand %p671_p3, %p667_p0 }
  0x71   : > { %v422_v32 = vpop.permute.xlu2 %421 }
  0x88   : > { %v352_v16 = vpop.permute.xlu1 %351 }
  0x8d   : > { %v632_v3 = vpop.permute.xlu0 %631 }
  0x8e   : > { %v634_v4 = vunpack.i.h.bf16 %v632_v3  ;;  %v633_v5 = vunpack.i.l.bf16 %v632_v3 }
  0x90   : > { %v337_v6 = vsel %vm336_vm0, %v633_v5, %v634_v4 }
  0x91   : > { %v635_v7 = vpack.i.bf16 %v634_v4, %v337_v6 }
  0x93   : > { %636 = vrot.lane.b32.xlu0 %v635_v7, %s730_s16 }
 0x105   : > { %v637_v10 = vpop.permute.xlu0 %636 }
 0x106   : > { %v639_v11 = vunpack.i.h.bf16 %v637_v10  ;;  %v638_v12 = vunpack.i.l.bf16 %v637_v10 }
 0x108   : > { %392 = vmatpush.msra.mxu1 %v639_v11  ;;  %v344_v13 = vsel %vm343_vm1, %v638_v12, %v639_v11 }
 0x109   : > { %372 = vmatpush.msra.mxu0 %v344_v13 }
 0x10a   : > { %393 = vmatpush.msra.mxu1 %v634_v4 }
 0x10b   : > { %373 = vmatpush.msra.mxu0 %v337_v6  ;;  %563 = vmatmul.msk.f32.vlgmr.msra.gmra.mxu1 %vm354_vm2, %v347_v14 }
 0x10c   : > { %562 = vmatmul.msk.f32.vlgmr.msra.gmra.mxu0 %vm354_vm2, %v347_v14 }
 0x188   : > { %v395_v18 = vpop.f32.mrf.mxu1 }
 0x189   : > { %v375_v19 = vpop.f32.mrf.mxu0  ;;  %v396_v20 = vadd.f32 %v395_v18, %v352_v16 }
 0x18a   : > { %v376_v21 = vadd.f32 %v375_v19, %v352_v16 }
 0x18b   : > { %v399_v22 = vmax.f32 %v396_v20, 0.0 }
 0x18c   : > { %v398_v23 = vmax.f32 %v376_v21, 0.0 }
 0x18e   : > { %v407_v24 = vsel %vm403_vm3, 0.0, %v398_v23 }
 0x18f   : > { %v641_v25 = vpack.i.bf16 %v399_v22, %v407_v24 }
 0x191   : > { %642 = vrot.lane.b32.xlu1 %v641_v25, %s730_s16  ;;  %s300_s16 = scalar_lea.vmem [#allocation2], %s559_s11 }
 0x192   : > { %s465_s17 = sshll.u32 %s300_s16, 4  ;;  %s466_s17 = int_to_ptr.vmem [resolvable:$true] %s465_s17 }
 0x203   : > { %v643_v27 = vpop.permute.xlu1 %642 }
 0x204   : > { %v645_v28 = vunpack.i.h.bf16 %v643_v27  ;;  %v644_v29 = vunpack.i.l.bf16 %v643_v27 }
 0x206   : > { %v415_v30 = vsel %vm343_vm1, %v644_v29, %v645_v28 }
 0x207   : > { %441 = vmatpush.msra.mxu2 %v415_v30 }
 0x209   : > { %565 = vmatpush.msk.msra.mxu2 %vm564_vm4, %v398_v23 }
 0x20a   : > { %566 = vmatmul.msk.f32.vlgmr.msra.gmra.mxu2 %vm354_vm2, %v417_v31 }
 0x28d   : > { %v444_v33 = vpop.f32.mrf.mxu2 }
 0x28e   : > { %v445_v34 = vadd.f32 %v444_v33, %v422_v32 }
 0x290   : > { %v447_v35 = vmax.f32 %v445_v34, 0.0 }
 0x292   : > { %v448_v36 = vadd.f32 %v447_v35, %v827_v0 }
 0x294   : > { %v449_v37 = vmax.f32 %v448_v36, 0.0 }
 0x296   : > { %450 = vst [vmem:[%s300_s16] sm:$0xff] %v449_v37 }
 0x297   : > { %675 = shalt.err (!%p672_p5)
}
 0x298   : > { %571 = dma.vmem_to_hbm [thread:$0]  (%p807_p4), %s466_s17, 128, %s468_s18, %s452_s19  }
 0x299 PF: > { %p577_p6 = scmp.ge.s32.totalorder %s726_s25, 2  ;;  %s479_s10 = sand.u32 1, %s706_s0  }
 0x29a   : > { %s480_s12 = scalar_lea.sflag [#allocation3], %s479_s10 }
 0x29b   : > { %p574_p7 = pnand %p577_p6, %p814_p8 }
 0x29d   : > { %p575_p9 = pneg %p574_p7 }
 0x29f   : > { %701 = dma.done.wait (%p575_p9), %s480_s12, 128  }
 0x2a0   : > { %703 = vsyncadd (%p575_p9), %s480_s12, 4294967168  ;;  %s19_s25 = sadd.s32 1, %s726_s25   ;;  %s896_s0 = smov %s710_s21 }
 0x2a1   : > { %p16_p10 = scmp.ge.s32.totalorder %s19_s25, 4   ;;  %s897_s21 = smov %s714_s22 }
 0x2a2   : > { %s898_s22 = smov %s820_s9  ;;  %s899_s23 = smov %s722_s24 }
 0x2a3   : > { %s900_s24 = smov %s902_s28  ;;  %18 = sbr.rel (!%p16_p10) target bundleno = 4 (0x4), region = 82 }
 0x2a8   :  { %486 = vsyncpa [#allocation3], 1 }
 0x2a9   :  { %488 = vsyncpa [#allocation3 + $0x1], 1 }

// kernel: temporal_conv_net.2
= control target key start
LH: loop header
LB: loop body
LE: loop exit
PB: predicated region body
PF: predicated region fallthrough
CT: control target
= control target key end

     0   :  { %s775_s26 = smov 0   ;;  %s777_s27 = smov 0   ;;  %s839_s0 = inlined_call_operand.vmem [shape: f32[2,4,128], index: 0, kind: input, shape index: {}, may-alias: {0,1}]   ;;  %s840_s1 = inlined_call_operand.vmem [shape: f32[2,4,128], index: 1, kind: input, shape index: {}, may-alias: {0,1}]   ;;  %s841_s2 = inlined_call_operand.vmem [shape: f32[8,8], index: 2, kind: input, shape index: {}]   ;;  %s842_s3 = inlined_call_operand.vmem [shape: f32[8,1], index: 3, kind: input, shape index: {}]   ;;  %s843_s4 = inlined_call_operand.vmem [shape: f32[8,16], index: 4, kind: input, shape index: {}]   ;;  %s844_s5 = inlined_call_operand.vmem [shape: f32[8,1], index: 5, kind: input, shape index: {}]   ;;  %s845_s6 = inlined_call_operand.vmem [shape: f32[8,4], index: 6, kind: input, shape index: {}]   ;;  %s846_s7 = inlined_call_operand.vmem [shape: f32[8,1], index: 7, kind: input, shape index: {}]   ;;  %s847_s8 = inlined_call_operand.vmem [shape: f32[2,8,128], index: 8, kind: output, shape index: {}]  }
   0x1   :  { %s779_s28 = smov 0  }
   0x2 LB: > { %s30_s29 = sadd.s32 1, %s720_s27  ;;  %p643_p0 = scmp.ge.s32.totalorder %s724_s28, 1  ;;  %s724_s28 = sphi %s779_s28, %s18_s28   ;;  %s720_s27 = sphi %s777_s27, %s849_s27   ;;  %s716_s26 = sphi %s775_s26, %s848_s26  }
   0x3   : > { %p32_p1 = scmp.ge.s32.totalorder %s30_s29, 2  ;;  %p306_p2 = scmp.lt.s32.totalorder %s724_s28, 3 }
   0x5   : > { %s851_s29 = smov (%p32_p1, %s30_s29), 0  ;;  %p307_p3 = pnand %p643_p0, %p306_p2 }
   0x6   : > { %p367_p4 = scmp.lt.s32.totalorder (!%p307_p3), %s716_s26, 1  ;;  %s727_s12 = smov (!%p307_p3), 2  }
   0x7   : > { %310 = sbr.rel (%p307_p3) target bundleno = 655 (0x28f), region = 52  ;;  %s728_s13 = smov (!%p307_p3), 127  }
   0xc   : > { %s853_s26 = smov (!%p367_p4, %s716_s26), 1  ;;  %v726_v1 = vmov 0.0   ;;  %vm396_vm0 = vcmask 15360   ;;  %vm409_vm1 = vcmask 1043456   ;;  %v413_v10 = vld [vmem:[%s842_s3] sm:$0xff]  ;;  %v729_v11 = vmov 0  }
   0xd   : > { %s645_s30 = sshll.u32 %s853_s26, 2  ;;  %694 = vset.pattern.permute.xlu1 %v729_v11  ;;  %700 = vset.pattern.permute.xlu2 %v729_v11  ;;  %vm405_vm2 = vcmask 1039360   ;;  %v412_v15 = vld [vmem:[%s841_s2] sm:$0xff]  ;;  %vm419_vm3 = vcmask 64512   ;;  %v465_v19 = vlaneseq  ;;  %vm521_vm5 = vcmask 31744   ;;  %s646_s25 = sshll.u32 %s853_s26, 3 }
   0xe   : > { %s373_s11 = scalar_lea.vmem %s840_s1, %s645_s30  ;;  %416 = vperm.xlu1 %694, %v413_v10   ;;  %701 = vset.pattern.permute.xlu0 %v729_v11  ;;  %v514_v30 = vld [vmem:[%s845_s6] sm:$0xff]  ;;  %vm489_vm7 = vcmask 130048   ;;  %s380_s10 = scalar_lea.vmem %s847_s8, %s646_s25 }
   0xf   : > { %v381_v0 = vld [vmem:[%s373_s11] sm:$0xf]  ;;  %v466_v21 = vand.u32 127, %v465_v19 }
  0x10   : > { %v684_v2 = vpack.i.bf16 %v381_v0, %v726_v1  ;;  %652 = vmatpush.msk.msra.mxu3 %vm409_vm1, %v381_v0  ;;  %v483_v31 = vld [vmem:[%s844_s5] sm:$0xff] }
  0x11   : > { %vm468_vm4 = vcmp.lt.s32.totalorder %v466_v21, 1  ;;  %653 = vmatmul.msk.f32.vlgmr.msra.gmra.mxu3 %vm521_vm5, %v514_v30  ;;  %486 = vperm.xlu2 %700, %v483_v31   ;;  %v515_v32 = vld [vmem:[%s846_s7] sm:$0xff] }
  0x12   : > { %685 = vrot.lane.b32.xlu0 %v684_v2, %s727_s12  ;;  %vm649_vm6 = vmneg %vm468_vm4  ;;  %v482_v37 = vld [vmem:[%s843_s4] sm:$0xff] }
  0x19   : > { %518 = vperm.xlu2 %700, %v515_v32  }
  0x6b   : > { %v487_v38 = vpop.permute.xlu2 %486 }
  0x73   : > { %v519_v39 = vpop.permute.xlu2 %518 }
  0x80   : > { %v417_v20 = vpop.permute.xlu1 %416 }
  0x84   : > { %v686_v3 = vpop.permute.xlu0 %685 }
  0x85   : > { %v688_v4 = vunpack.i.h.bf16 %v686_v3  ;;  %v687_v5 = vunpack.i.l.bf16 %v686_v3 }
  0x87   : > { %v397_v6 = vsel %vm396_vm0, %v687_v5, %v688_v4  ;;  %v400_v7 = vrot.slane %v688_v4, 4 }
  0x88   : > { %v399_v8 = vrot.slane %v397_v6, 4 }
  0x8a   : > { %v689_v9 = vpack.i.bf16 %v400_v7, %v399_v8 }
  0x8c   : > { %690 = vrot.lane.b32.xlu0 %v689_v9, %s728_s13 }
  0x94   : > { %v544_v40 = vpop.f32.mrf.mxu3 }
  0x95   : > { %v545_v43 = vadd.f32 %v544_v40, %v519_v39 }
  0xfe   : > { %v691_v12 = vpop.permute.xlu0 %690 }
  0xff   : > { %v693_v13 = vunpack.i.h.bf16 %v691_v12  ;;  %v692_v14 = vunpack.i.l.bf16 %v691_v12 }
 0x101   : > { %v411_v16 = vsel %vm409_vm1, %v688_v4, %v693_v13  ;;  %v406_v17 = vsel %vm405_vm2, %v692_v14, %v693_v13 }
 0x102   : > { %458 = vmatpush.msra.mxu1 %v411_v16  ;;  %v410_v18 = vsel %vm409_vm1, %v397_v6, %v406_v17 }
 0x103   : > { %438 = vmatpush.msra.mxu0 %v410_v18  ;;  %648 = vmatmul.msk.f32.vlgmr.msra.gmra.mxu1 %vm419_vm3, %v412_v15 }
 0x104   : > { %647 = vmatmul.msk.f32.vlgmr.msra.gmra.mxu0 %vm419_vm3, %v412_v15 }
 0x180   : > { %v460_v22 = vpop.f32.mrf.mxu1 }
 0x181   : > { %v440_v23 = vpop.f32.mrf.mxu0  ;;  %v461_v24 = vadd.f32 %v460_v22, %v417_v20 }
 0x182   : > { %v441_v25 = vadd.f32 %v440_v23, %v417_v20 }
 0x183   : > { %v464_v26 = vmax.f32 %v461_v24, 0.0 }
 0x184   : > { %v463_v27 = vmax.f32 %v441_v25, 0.0 }
 0x186   : > { %v472_v28 = vsel %vm468_vm4, 0.0, %v463_v27 }
 0x187   : > { %v695_v29 = vpack.i.bf16 %v464_v26, %v472_v28 }
 0x189   : > { %696 = vrot.lane.b32.xlu1 %v695_v29, %s728_s13 }
 0x1fb   : > { %v697_v33 = vpop.permute.xlu1 %696 }
 0x1fc   : > { %v699_v34 = vunpack.i.h.bf16 %v697_v33  ;;  %v698_v35 = vunpack.i.l.bf16 %v697_v33 }
 0x1fe   : > { %v480_v36 = vsel %vm405_vm2, %v698_v35, %v699_v34 }
 0x1ff   : > { %507 = vmatpush.msra.mxu2 %v480_v36 }
 0x201   : > { %650 = vmatpush.msk.msra.mxu2 %vm649_vm6, %v463_v27 }
 0x202   : > { %651 = vmatmul.msk.f32.vlgmr.msra.gmra.mxu2 %vm489_vm7, %v482_v37 }
 0x285   : > { %v510_v41 = vpop.f32.mrf.mxu2 }
 0x286   : > { %v511_v42 = vadd.f32 %v510_v41, %v487_v38 }
 0x288   : > { %v513_v44 = vmax.f32 %v511_v42, 0.0 }
 0x28a   : > { %v547_v45 = vadd.f32 %v545_v43, %v513_v44 }
 0x28c   : > { %v548_v46 = vmax.f32 %v547_v45, 0.0 }
 0x28e   : > { %549 = vst [vmem:[%s380_s10] sm:$0xff] %v548_v46 }
 0x28f PF: > { %s18_s28 = sadd.s32 1, %s724_s28   ;;  %s848_s26 = smov %s720_s27 }
 0x290   : > { %p15_p5 = scmp.ge.s32.totalorder %s18_s28, 4   ;;  %s849_s27 = smov %s851_s29 }
 0x292   :  { %17 = sbr.rel (!%p15_p5) target bundleno = 2 (0x2), region = 85 }

</bundles_post_ra>
